<compile_context>
chip_gen: v7x
topology: tpu7x:2x2x1
jax: 0.10.0
libtpu: 0.0.40
codegen_flags: <defaults>
</compile_context>

<pallas_src>
import functools

import jax
import jax.numpy as jnp
import numpy as np
from jax.experimental import pallas as pl
from jax.experimental.pallas import tpu as pltpu

CH = 5                       # EEG channels  (H in NCHW)
FB = 7                       # frequency bands (W in NCHW)
LATENT = 64
C1, C2 = 16, 32
FLAT = C2 * CH * (FB // 4)   # 32 * 5 * 1 = 160

HALF1 = 256                  # lane width of each conv1 even/odd half (content 5*3*16 = 240)
HALF2 = 256                  # lane width of each conv2 half          (content 5*32   = 160)
DEC1 = CH * 2 * C1           # fused fc2∘deconv1 output width = 160
OUTW = CH * FB               # decoded image width = 35
SLAB = 128                   # lane-dense output slab: [ out(35) | pad(29) | latent(64) ]
LAT_OFF = SLAB - LATENT      # latent occupies lanes 64..127


# --------------------------------------------------------------------------------------
# Pallas kernel: the entire forward pass = 5 matmuls + 2 maxes + 3 ReLUs + sigmoid,
# ending in ONE unmasked 128-lane store per batch tile.
# --------------------------------------------------------------------------------------
def eeg_autoencoder_kernel(x_ref, w1_ref, b1_ref, w2_ref, b2_ref,
                           wl_ref, bl_ref, wd1_ref, bd1_ref,
                           wd2_ref, bd2_ref, out_ref):
    f32 = jnp.float32
    wdt = w1_ref.dtype                                                # bf16 (or f32)
    x = x_ref[...]                                                    # (TB, 35)

    # conv1 (+ReLU) as one block-diagonal Toeplitz matmul -> (TB, 512)
    c1 = jnp.maximum(
        jnp.dot(x, w1_ref[...], preferred_element_type=f32) + b1_ref[...], 0.0)
    # MaxPool2d((1,2)): even vs. odd output-column halves (128-aligned slices)
    p1 = jnp.maximum(c1[:, :HALF1], c1[:, HALF1:]).astype(wdt)        # (TB, 256)

    # conv2 (+ReLU) Toeplitz; only the two columns that survive pool2 -> (TB, 512)
    c2 = jnp.maximum(
        jnp.dot(p1, w2_ref[...], preferred_element_type=f32) + b2_ref[...], 0.0)
    enc = jnp.maximum(c2[:, :HALF2], c2[:, HALF2:]).astype(wdt)       # (TB, 256)

    # fc1 -> latent packed into lanes [64,128) of a 128-lane slab (lanes [0,64) are 0)
    lat = jnp.dot(enc, wl_ref[...], preferred_element_type=f32) + bl_ref[...]   # (TB, 128)

    # decoder: fc2 ∘ deconv1 composed offline; weight rows [0,64) are zero, so the
    # padded latent slab feeds it directly. ReLU -> (TB, 160)
    y = jnp.maximum(
        jnp.dot(lat.astype(wdt), wd1_ref[...], preferred_element_type=f32) + bd1_ref[...],
        0.0)
    # deconv2 (+bias incl. ConvTranspose output-padding cols); image in lanes [0,35)
    dec = jnp.dot(y.astype(wdt), wd2_ref[...], preferred_element_type=f32) + bd2_ref[...]

    # Pack sigmoid(decoded) (lanes < 64) and latent (lanes >= 64) into one 128-lane slab.
    col = jax.lax.broadcasted_iota(jnp.int32, out_ref.shape, 1)
    out_ref[...] = jnp.where(col < LAT_OFF, jax.nn.sigmoid(dec), lat)


# --------------------------------------------------------------------------------------
# Parameter init (torch-shaped, deterministic) and one-time repacking into fused layouts.
# --------------------------------------------------------------------------------------
def init_params(key):
    ks = jax.random.split(key, 12)

    def u(k, shape, fan_in):
        bound = 1.0 / np.sqrt(fan_in)
        return jax.random.uniform(k, shape, jnp.float32, -bound, bound)

    return dict(
        c1w=u(ks[0], (C1, 1, 1, 3), 3), c1b=u(ks[1], (C1,), 3),
        c2w=u(ks[2], (C2, C1, 1, 3), C1 * 3), c2b=u(ks[3], (C2,), C1 * 3),
        f1w=u(ks[4], (LATENT, FLAT), FLAT), f1b=u(ks[5], (LATENT,), FLAT),
        f2w=u(ks[6], (FLAT, LATENT), LATENT), f2b=u(ks[7], (FLAT,), LATENT),
        d1w=u(ks[8], (C2, C1, 1, 2), C1 * 2), d1b=u(ks[9], (C1,), C1 * 2),
        d2w=u(ks[10], (C1, 1, 1, 2), 2), d2b=u(ks[11], (1,), 2),
    )


def pack_params(p, dtype=jnp.bfloat16):
    """Repack torch-shaped params into the fused kernel layouts.  Call ONCE and reuse."""
    c1w = np.asarray(p['c1w'], np.float32)   # (16, 1, 1, 3)
    c1b = np.asarray(p['c1b'], np.float32)
    c2w = np.asarray(p['c2w'], np.float32)   # (32, 16, 1, 3)
    c2b = np.asarray(p['c2b'], np.float32)
    f1w = np.asarray(p['f1w'], np.float32)   # (64, 160)
    f1b = np.asarray(p['f1b'], np.float32)
    f2w = np.asarray(p['f2w'], np.float32)   # (160, 64)
    f2b = np.asarray(p['f2b'], np.float32)
    d1w = np.asarray(p['d1w'], np.float32)   # (32, 16, 1, 2)
    d1b = np.asarray(p['d1b'], np.float32)
    d2w = np.asarray(p['d2w'], np.float32)   # (16, 1, 1, 2)
    d2b = np.asarray(p['d2b'], np.float32)   # (1,)

    # conv1 -> block-diagonal Toeplitz (35, 512); even output cols in [0,256), odd in [256,512)
    W1 = np.zeros((CH * FB, 2 * HALF1), np.float32)
    B1 = np.zeros((1, 2 * HALF1), np.float32)
    for h in range(CH):
        for e in range(3):                        # pooled pair index (output col 6 is dropped)
            for par in range(2):                  # 0 -> col 2e, 1 -> col 2e+1
                wo = 2 * e + par
                col = par * HALF1 + h * 48 + e * C1
                B1[0, col:col + C1] = c1b
                for k in range(3):
                    uu = wo + k - 1               # unpadded input column
                    if 0 <= uu < FB:
                        W1[h * FB + uu, col:col + C1] = c1w[:, 0, 0, k]

    # conv2 -> Toeplitz on the pooled (h, pw, ci) layout; only the 2 cols surviving pool2
    W2 = np.zeros((HALF1, 2 * HALF2), np.float32)
    B2 = np.zeros((1, 2 * HALF2), np.float32)
    for h in range(CH):
        for wo in range(2):                       # output col 2 is dropped by pool2
            col = wo * HALF2 + h * C2
            B2[0, col:col + C2] = c2b
            for pw in range(3):
                k = pw - wo + 1
                if 0 <= k <= 2:
                    row = h * 48 + pw * C1
                    W2[row:row + C1, col:col + C2] = c2w[:, :, 0, k].T   # (ci, co)

    # fc1 on the (h, co) encoded layout; torch flatten order is co*CH + h.
    # Latent is packed into lanes [LAT_OFF, 128) of the 128-lane output slab.
    Wl = np.zeros((HALF2, SLAB), np.float32)
    Bl = np.zeros((1, SLAB), np.float32)
    for h in range(CH):
        for co in range(C2):
            Wl[h * C2 + co, LAT_OFF:] = f1w[:, co * CH + h]
    Bl[0, LAT_OFF:] = f1b

    # fc2 ∘ deconv1 composed offline (linear ∘ linear).  Input rows [0,64) are zero so the
    # padded latent slab can be fed directly.  deconv1's output-padding column (j=2)
    # contributes only its ReLU'd bias and is folded into the deconv2 bias below.
    Wd1 = np.zeros((SLAB, DEC1), np.float32)
    Bd1 = np.zeros((1, DEC1), np.float32)
    for h in range(CH):
        rows = np.arange(C2) * CH + h             # fc2 output rows feeding EEG row h
        for j in range(2):                        # deconv1 taps (output cols 0 and 1)
            col = h * 2 * C1 + j * C1
            Wd1[LAT_OFF:, col:col + C1] = f2w[rows, :].T @ d1w[:, :, 0, j]   # (64, 16)
            Bd1[0, col:col + C1] = f2b[rows] @ d1w[:, :, 0, j] + d1b

    # deconv2 folded into one matmul + bias; decoded image occupies lanes [0, 35) of the
    # 128-lane output slab; ConvTranspose output-padding cols -> bias.
    Wd2 = np.zeros((DEC1, SLAB), np.float32)
    Bd2 = np.zeros((1, SLAB), np.float32)
    pad_col = np.maximum(d1b, 0.0)                # ReLU'd deconv1 output-padding column
    for h in range(CH):
        Bd2[0, h * FB:(h + 1) * FB] = d2b[0]
        for j in range(2):
            for m in range(2):
                Wd2[h * 2 * C1 + j * C1: h * 2 * C1 + (j + 1) * C1,
                    h * FB + 2 * j + m] = d2w[:, 0, 0, m]
        for m in range(2):                        # contribution of deconv1's padding col (j=2)
            Bd2[0, h * FB + 4 + m] += pad_col @ d2w[:, 0, 0, m]

    # Weights in bf16 (MXU-native on v6e/v7x, halves VMEM/HBM traffic); biases stay f32
    # (f32 accumulation via preferred_element_type bounds the error).
    def w(a):
        return jnp.asarray(a, dtype)

    def b(a):
        return jnp.asarray(a, jnp.float32)

    return (w(W1), b(B1), w(W2), b(B2), w(Wl), b(Bl), w(Wd1), b(Bd1), w(Wd2), b(Bd2))


def _round_up(n, m):
    return (n + m - 1) // m * m


@functools.partial(jax.jit, static_argnames=("tile_b",))
def eeg_autoencoder_forward(x, packed, tile_b=1024):
    """x: (B, 5, 7); packed: output of pack_params (packed once, reused across calls)."""
    B = x.shape[0]
    wdt = packed[0].dtype
    x2 = jnp.asarray(x).reshape(B, OUTW).astype(wdt)                  # (B, 35) lane-dense

    tile_b = _round_up(tile_b, 16)                                    # bf16 sublane packing
    tb = min(tile_b, _round_up(B, 16))
    if B > tb:
        Bp = _round_up(B, 2 * tb)     # even grid length -> both v7x TensorCores get work
    else:
        Bp = tb
    if Bp != B:
        x2 = jnp.pad(x2, ((0, Bp - B), (0, 0)))

    slab = pl.pallas_call(
        eeg_autoencoder_kernel,
        out_shape=jax.ShapeDtypeStruct((Bp, SLAB), jnp.float32),
        grid=(Bp // tb,),
        in_specs=[pl.BlockSpec((tb, OUTW), lambda i: (i, 0))]
                 + [pl.BlockSpec(a.shape, lambda i: (0, 0)) for a in packed],
        out_specs=pl.BlockSpec((tb, SLAB), lambda i: (i, 0)),
        compiler_params=pltpu.CompilerParams(
            dimension_semantics=("parallel",),
            vmem_limit_bytes=64 * 1024 * 1024),
    )(x2, *packed)

    out = slab[:B, :OUTW].reshape(B, CH, FB)
    latent = slab[:B, LAT_OFF:]
    return out, latent


# --------------------------------------------------------------------------------------
# Pure-JAX reference of the PyTorch forward (NCHW), used only to validate the kernel.
# --------------------------------------------------------------------------------------
def reference_forward(x, p):
    B = x.shape[0]
    xi = x[:, None, :, :]                                               # (B,1,5,7)
    xp = jnp.pad(xi, ((0, 0), (0, 0), (0, 0), (1, 1)))
    pat1 = jnp.stack([xp[..., k:k + FB] for k in range(3)], axis=-1)    # (B,1,5,7,3)
    h1 = jnp.einsum('bihwk,oik->bohw', pat1, p['c1w'][:, :, 0, :]) + p['c1b'][None, :, None, None]
    h1 = jnp.maximum(h1, 0.0)
    h1 = jnp.maximum(h1[..., 0:6:2], h1[..., 1:7:2])                    # (B,16,5,3)
    hp = jnp.pad(h1, ((0, 0), (0, 0), (0, 0), (1, 1)))
    pat2 = jnp.stack([hp[..., k:k + 3] for k in range(3)], axis=-1)     # (B,16,5,3,3)
    h2 = jnp.einsum('bihwk,oik->bohw', pat2, p['c2w'][:, :, 0, :]) + p['c2b'][None, :, None, None]
    h2 = jnp.maximum(h2, 0.0)
    h2 = jnp.maximum(h2[..., 0:1], h2[..., 1:2])                        # (B,32,5,1)
    flat = h2.reshape(B, FLAT)
    latent = flat @ p['f1w'].T + p['f1b']
    d = latent @ p['f2w'].T + p['f2b']
    t = d.reshape(B, C2, CH)                                            # deconv1 input (width 1)
    y0 = jnp.einsum('bih,io->boh', t, p['d1w'][:, :, 0, 0])
    y1 = jnp.einsum('bih,io->boh', t, p['d1w'][:, :, 0, 1])
    y = jnp.stack([y0, y1, jnp.zeros_like(y0)], axis=-1) + p['d1b'][None, :, None, None]
    y = jnp.maximum(y, 0.0)                                             # (B,16,5,3)
    z = jnp.zeros((B, 1, CH, FB), jnp.float32)
    for j in range(3):
        for k in range(2):
            z = z.at[..., 2 * j + k].set(
                jnp.einsum('bih,io->boh', y[..., j], p['d2w'][:, :, 0, k]))
    z = z + p['d2b'][None, :, None, None]
    return jax.nn.sigmoid(z)[:, 0, :, :], latent


if __name__ == "__main__":
    key = jax.random.PRNGKey(0)
    pkey, xkey = jax.random.split(key)
    params = init_params(pkey)

    # Pack + upload the fused weights ONCE (hoisted out of the per-call forward).
    packed = pack_params(params, dtype=jnp.bfloat16)

    B = 4
    x = jax.random.uniform(xkey, (B, CH, FB), jnp.float32)

    out, latent = jax.block_until_ready(eeg_autoencoder_forward(x, packed))

    with jax.default_matmul_precision("float32"):
        ref_out, ref_lat = reference_forward(x, params)
    ref_out, ref_lat = jax.block_until_ready((ref_out, ref_lat))

    # bf16 weights/activations with f32 accumulation: loosened tolerance vs. f32 reference.
    np.testing.assert_allclose(np.asarray(out), np.asarray(ref_out), rtol=2e-2, atol=2e-2)
    np.testing.assert_allclose(np.asarray(latent), np.asarray(ref_lat), rtol=2e-2, atol=2e-2)

    print("KERNEL_OK")
</pallas_src>

<mosaic_0001>
module attributes {stable_mosaic.version = 11 : i64} {
  func.func @eeg_autoencoder_kernel(%arg0: i32, %arg1: memref<16x35xbf16, #tpu.memory_space<vmem>>, %arg2: memref<35x512xbf16, #tpu.memory_space<vmem>>, %arg3: memref<1x512xf32, #tpu.memory_space<vmem>>, %arg4: memref<256x512xbf16, #tpu.memory_space<vmem>>, %arg5: memref<1x512xf32, #tpu.memory_space<vmem>>, %arg6: memref<256x128xbf16, #tpu.memory_space<vmem>>, %arg7: memref<1x128xf32, #tpu.memory_space<vmem>>, %arg8: memref<128x160xbf16, #tpu.memory_space<vmem>>, %arg9: memref<1x160xf32, #tpu.memory_space<vmem>>, %arg10: memref<160x128xbf16, #tpu.memory_space<vmem>>, %arg11: memref<1x128xf32, #tpu.memory_space<vmem>>, %arg12: memref<16x128xf32, #tpu.memory_space<vmem>>) attributes {dimension_semantics = [#tpu.dimension_semantics<parallel>], iteration_bounds = array<i64: 1>, scalar_prefetch = 0 : i64, scratch_operands = 0 : i64, tpu.core_type = #tpu.core_type<tc>, window_params = [{transform_indices = @transform_0, window_bounds = array<i64: 16, 35>}, {pipeline_mode = #tpu.pipeline_mode<synchronous>, transform_indices = @transform_1, window_bounds = array<i64: 35, 512>}, {pipeline_mode = #tpu.pipeline_mode<synchronous>, transform_indices = @transform_2, window_bounds = array<i64: 1, 512>}, {pipeline_mode = #tpu.pipeline_mode<synchronous>, transform_indices = @transform_3, window_bounds = array<i64: 256, 512>}, {pipeline_mode = #tpu.pipeline_mode<synchronous>, transform_indices = @transform_4, window_bounds = array<i64: 1, 512>}, {pipeline_mode = #tpu.pipeline_mode<synchronous>, transform_indices = @transform_5, window_bounds = array<i64: 256, 128>}, {pipeline_mode = #tpu.pipeline_mode<synchronous>, transform_indices = @transform_6, window_bounds = array<i64: 1, 128>}, {pipeline_mode = #tpu.pipeline_mode<synchronous>, transform_indices = @transform_7, window_bounds = array<i64: 128, 160>}, {pipeline_mode = #tpu.pipeline_mode<synchronous>, transform_indices = @transform_8, window_bounds = array<i64: 1, 160>}, {pipeline_mode = #tpu.pipeline_mode<synchronous>, transform_indices = @transform_9, window_bounds = array<i64: 160, 128>}, {pipeline_mode = #tpu.pipeline_mode<synchronous>, transform_indices = @transform_10, window_bounds = array<i64: 1, 128>}, {transform_indices = @transform_11, window_bounds = array<i64: 16, 128>}]} {
    %c0 = arith.constant 0 : index
    %c0_0 = arith.constant 0 : index
    %0 = vector.load %arg1[%c0, %c0_0] : memref<16x35xbf16, #tpu.memory_space<vmem>>, vector<16x35xbf16>
    %c0_1 = arith.constant 0 : index
    %c0_2 = arith.constant 0 : index
    %1 = vector.load %arg2[%c0_1, %c0_2] : memref<35x512xbf16, #tpu.memory_space<vmem>>, vector<35x512xbf16>
    %cst = arith.constant dense<0.000000e+00> : vector<16x512xf32>
    %2 = tpu.matmul %0, %1, %cst {dimension_numbers = #tpu.dot_dimension_numbers<[1], [0], [0], [1], [0, 0, 1, 1], [], []>} : vector<16x35xbf16>, vector<35x512xbf16>, vector<16x512xf32> -> vector<16x512xf32>
    %c0_3 = arith.constant 0 : index
    %c0_4 = arith.constant 0 : index
    %3 = vector.load %arg3[%c0_3, %c0_4] : memref<1x512xf32, #tpu.memory_space<vmem>>, vector<1x512xf32>
    %4 = vector.broadcast %3 : vector<1x512xf32> to vector<16x512xf32>
    %5 = arith.addf %2, %4 : vector<16x512xf32>
    %cst_5 = arith.constant 0.000000e+00 : f32
    %6 = vector.broadcast %cst_5 : f32 to vector<16x512xf32>
    %7 = arith.maximumf %5, %6 : vector<16x512xf32>
    %8 = vector.extract_strided_slice %7 {offsets = [0, 0], sizes = [16, 256], strides = [1, 1]} : vector<16x512xf32> to vector<16x256xf32>
    %9 = vector.extract_strided_slice %7 {offsets = [0, 256], sizes = [16, 256], strides = [1, 1]} : vector<16x512xf32> to vector<16x256xf32>
    %10 = arith.maximumf %8, %9 : vector<16x256xf32>
    %11 = arith.truncf %10 : vector<16x256xf32> to vector<16x256xbf16>
    %c0_6 = arith.constant 0 : index
    %c0_7 = arith.constant 0 : index
    %12 = vector.load %arg4[%c0_6, %c0_7] : memref<256x512xbf16, #tpu.memory_space<vmem>>, vector<256x512xbf16>
    %cst_8 = arith.constant dense<0.000000e+00> : vector<16x512xf32>
    %13 = tpu.matmul %11, %12, %cst_8 {dimension_numbers = #tpu.dot_dimension_numbers<[1], [0], [0], [1], [0, 0, 1, 1], [], []>} : vector<16x256xbf16>, vector<256x512xbf16>, vector<16x512xf32> -> vector<16x512xf32>
    %c0_9 = arith.constant 0 : index
    %c0_10 = arith.constant 0 : index
    %14 = vector.load %arg5[%c0_9, %c0_10] : memref<1x512xf32, #tpu.memory_space<vmem>>, vector<1x512xf32>
    %15 = vector.broadcast %14 : vector<1x512xf32> to vector<16x512xf32>
    %16 = arith.addf %13, %15 : vector<16x512xf32>
    %cst_11 = arith.constant 0.000000e+00 : f32
    %17 = vector.broadcast %cst_11 : f32 to vector<16x512xf32>
    %18 = arith.maximumf %16, %17 : vector<16x512xf32>
    %19 = vector.extract_strided_slice %18 {offsets = [0, 0], sizes = [16, 256], strides = [1, 1]} : vector<16x512xf32> to vector<16x256xf32>
    %20 = vector.extract_strided_slice %18 {offsets = [0, 256], sizes = [16, 256], strides = [1, 1]} : vector<16x512xf32> to vector<16x256xf32>
    %21 = arith.maximumf %19, %20 : vector<16x256xf32>
    %22 = arith.truncf %21 : vector<16x256xf32> to vector<16x256xbf16>
    %c0_12 = arith.constant 0 : index
    %c0_13 = arith.constant 0 : index
    %23 = vector.load %arg6[%c0_12, %c0_13] : memref<256x128xbf16, #tpu.memory_space<vmem>>, vector<256x128xbf16>
    %cst_14 = arith.constant dense<0.000000e+00> : vector<16x128xf32>
    %24 = tpu.matmul %22, %23, %cst_14 {dimension_numbers = #tpu.dot_dimension_numbers<[1], [0], [0], [1], [0, 0, 1, 1], [], []>} : vector<16x256xbf16>, vector<256x128xbf16>, vector<16x128xf32> -> vector<16x128xf32>
    %c0_15 = arith.constant 0 : index
    %c0_16 = arith.constant 0 : index
    %25 = vector.load %arg7[%c0_15, %c0_16] : memref<1x128xf32, #tpu.memory_space<vmem>>, vector<1x128xf32>
    %26 = vector.broadcast %25 : vector<1x128xf32> to vector<16x128xf32>
    %27 = arith.addf %24, %26 : vector<16x128xf32>
    %28 = arith.truncf %27 : vector<16x128xf32> to vector<16x128xbf16>
    %c0_17 = arith.constant 0 : index
    %c0_18 = arith.constant 0 : index
    %29 = vector.load %arg8[%c0_17, %c0_18] : memref<128x160xbf16, #tpu.memory_space<vmem>>, vector<128x160xbf16>
    %cst_19 = arith.constant dense<0.000000e+00> : vector<16x160xf32>
    %30 = tpu.matmul %28, %29, %cst_19 {dimension_numbers = #tpu.dot_dimension_numbers<[1], [0], [0], [1], [0, 0, 1, 1], [], []>} : vector<16x128xbf16>, vector<128x160xbf16>, vector<16x160xf32> -> vector<16x160xf32>
    %c0_20 = arith.constant 0 : index
    %c0_21 = arith.constant 0 : index
    %31 = vector.load %arg9[%c0_20, %c0_21] : memref<1x160xf32, #tpu.memory_space<vmem>>, vector<1x160xf32>
    %32 = vector.broadcast %31 : vector<1x160xf32> to vector<16x160xf32>
    %33 = arith.addf %30, %32 : vector<16x160xf32>
    %cst_22 = arith.constant 0.000000e+00 : f32
    %34 = vector.broadcast %cst_22 : f32 to vector<16x160xf32>
    %35 = arith.maximumf %33, %34 : vector<16x160xf32>
    %36 = arith.truncf %35 : vector<16x160xf32> to vector<16x160xbf16>
    %c0_23 = arith.constant 0 : index
    %c0_24 = arith.constant 0 : index
    %37 = vector.load %arg10[%c0_23, %c0_24] : memref<160x128xbf16, #tpu.memory_space<vmem>>, vector<160x128xbf16>
    %cst_25 = arith.constant dense<0.000000e+00> : vector<16x128xf32>
    %38 = tpu.matmul %36, %37, %cst_25 {dimension_numbers = #tpu.dot_dimension_numbers<[1], [0], [0], [1], [0, 0, 1, 1], [], []>} : vector<16x160xbf16>, vector<160x128xbf16>, vector<16x128xf32> -> vector<16x128xf32>
    %c0_26 = arith.constant 0 : index
    %c0_27 = arith.constant 0 : index
    %39 = vector.load %arg11[%c0_26, %c0_27] : memref<1x128xf32, #tpu.memory_space<vmem>>, vector<1x128xf32>
    %40 = vector.broadcast %39 : vector<1x128xf32> to vector<16x128xf32>
    %41 = arith.addf %38, %40 : vector<16x128xf32>
    %42 = tpu.iota {dimensions = array<i32: 1>} : vector<16x128xi32>
    %c64_i32 = arith.constant 64 : i32
    %43 = vector.broadcast %c64_i32 : i32 to vector<16x128xi32>
    %44 = arith.cmpi slt, %42, %43 : vector<16x128xi32>
    %45 = arith.negf %41 : vector<16x128xf32>
    %46 = math.exp %45 : vector<16x128xf32>
    %cst_28 = arith.constant 1.000000e+00 : f32
    %47 = vector.broadcast %cst_28 : f32 to vector<16x128xf32>
    %48 = arith.addf %47, %46 : vector<16x128xf32>
    %49 = arith.divf %47, %48 : vector<16x128xf32>
    %50 = arith.select %44, %49, %27 : vector<16x128xi1>, vector<16x128xf32>
    %c0_29 = arith.constant 0 : index
    %c0_30 = arith.constant 0 : index
    %51 = vector.load %arg12[%c0_29, %c0_30] : memref<16x128xf32, #tpu.memory_space<vmem>>, vector<16x128xf32>
    tpu.vector_store %arg12[%c0_29, %c0_30], %50 {strides = array<i32>} : memref<16x128xf32, #tpu.memory_space<vmem>>, vector<16x128xf32>,
    return
  }
  func.func @transform_0(%arg0: i32) -> (i32, i32) {
    %c0_i32 = arith.constant 0 : i32
    %c0_i32_0 = arith.constant 0 : i32
    return %arg0, %c0_i32 : i32, i32
  }
  func.func @transform_1(%arg0: i32) -> (i32, i32) {
    %c0_i32 = arith.constant 0 : i32
    %c0_i32_0 = arith.constant 0 : i32
    %c0_i32_1 = arith.constant 0 : i32
    return %c0_i32, %c0_i32_0 : i32, i32
  }
  func.func @transform_2(%arg0: i32) -> (i32, i32) {
    %c0_i32 = arith.constant 0 : i32
    %c0_i32_0 = arith.constant 0 : i32
    %c0_i32_1 = arith.constant 0 : i32
    return %c0_i32, %c0_i32_0 : i32, i32
  }
  func.func @transform_3(%arg0: i32) -> (i32, i32) {
    %c0_i32 = arith.constant 0 : i32
    %c0_i32_0 = arith.constant 0 : i32
    %c0_i32_1 = arith.constant 0 : i32
    return %c0_i32, %c0_i32_0 : i32, i32
  }
  func.func @transform_4(%arg0: i32) -> (i32, i32) {
    %c0_i32 = arith.constant 0 : i32
    %c0_i32_0 = arith.constant 0 : i32
    %c0_i32_1 = arith.constant 0 : i32
    return %c0_i32, %c0_i32_0 : i32, i32
  }
  func.func @transform_5(%arg0: i32) -> (i32, i32) {
    %c0_i32 = arith.constant 0 : i32
    %c0_i32_0 = arith.constant 0 : i32
    %c0_i32_1 = arith.constant 0 : i32
    return %c0_i32, %c0_i32_0 : i32, i32
  }
  func.func @transform_6(%arg0: i32) -> (i32, i32) {
    %c0_i32 = arith.constant 0 : i32
    %c0_i32_0 = arith.constant 0 : i32
    %c0_i32_1 = arith.constant 0 : i32
    return %c0_i32, %c0_i32_0 : i32, i32
  }
  func.func @transform_7(%arg0: i32) -> (i32, i32) {
    %c0_i32 = arith.constant 0 : i32
    %c0_i32_0 = arith.constant 0 : i32
    %c0_i32_1 = arith.constant 0 : i32
    return %c0_i32, %c0_i32_0 : i32, i32
  }
  func.func @transform_8(%arg0: i32) -> (i32, i32) {
    %c0_i32 = arith.constant 0 : i32
    %c0_i32_0 = arith.constant 0 : i32
    %c0_i32_1 = arith.constant 0 : i32
    return %c0_i32, %c0_i32_0 : i32, i32
  }
  func.func @transform_9(%arg0: i32) -> (i32, i32) {
    %c0_i32 = arith.constant 0 : i32
    %c0_i32_0 = arith.constant 0 : i32
    %c0_i32_1 = arith.constant 0 : i32
    return %c0_i32, %c0_i32_0 : i32, i32
  }
  func.func @transform_10(%arg0: i32) -> (i32, i32) {
    %c0_i32 = arith.constant 0 : i32
    %c0_i32_0 = arith.constant 0 : i32
    %c0_i32_1 = arith.constant 0 : i32
    return %c0_i32, %c0_i32_0 : i32, i32
  }
  func.func @transform_11(%arg0: i32) -> (i32, i32) {
    %c0_i32 = arith.constant 0 : i32
    %c0_i32_0 = arith.constant 0 : i32
    return %arg0, %c0_i32 : i32, i32
  }
}

</mosaic_0001>

<bundles_post_ra>
// kernel: eeg_autoencoder_forward.1
= control target key start
LH: loop header
LB: loop body
LE: loop exit
PB: predicated region body
PF: predicated region fallthrough
CT: control target
= control target key end

     0   :  { %16 = vsyncpa [#allocation3], 0  ;;  %s2312_s0 = inlined_call_operand.hbm [shape: bf16[16,35], index: 0, kind: input, shape index: {}]   ;;  %s2313_s1 = inlined_call_operand.hbm [shape: bf16[35,512], index: 1, kind: input, shape index: {}]   ;;  %s2314_s2 = inlined_call_operand.hbm [shape: f32[1,512], index: 2, kind: input, shape index: {}]   ;;  %s2315_s3 = inlined_call_operand.hbm [shape: bf16[256,512], index: 3, kind: input, shape index: {}]   ;;  %s2316_s4 = inlined_call_operand.hbm [shape: f32[1,512], index: 4, kind: input, shape index: {}]   ;;  %s2317_s5 = inlined_call_operand.hbm [shape: bf16[256,128], index: 5, kind: input, shape index: {}]   ;;  %s2318_s6 = inlined_call_operand.hbm [shape: f32[1,128], index: 6, kind: input, shape index: {}]   ;;  %s2319_s7 = inlined_call_operand.hbm [shape: bf16[128,160], index: 7, kind: input, shape index: {}]   ;;  %s2320_s8 = inlined_call_operand.hbm [shape: f32[1,160], index: 8, kind: input, shape index: {}]   ;;  %s2321_s9 = inlined_call_operand.hbm [shape: bf16[160,128], index: 9, kind: input, shape index: {}]   ;;  %s2322_s10 = inlined_call_operand.hbm [shape: f32[1,128], index: 10, kind: input, shape index: {}]   ;;  %s2323_s11 = inlined_call_operand.hbm [shape: f32[16,128], index: 11, kind: output, shape index: {}]  }
   0x1   :  { %17 = vsyncpa [#allocation6], 0 }
   0x2   :  { %18 = vsyncpa [#allocation9], 0 }
   0x3   :  { %19 = vsyncpa [#allocation12], 0 }
   0x4   :  { %20 = vsyncpa [#allocation15], 0 }
   0x5   :  { %21 = vsyncpa [#allocation18], 0 }
   0x6   :  { %22 = vsyncpa [#allocation4], 0  ;;  %s2018_s17 = smov [#allocation5]   ;;  %s1740_s21 = scalar_lea.hbm %s2313_s1, 1280 }
   0x7   :  { %s40_s18 = sshll.u32 %s2018_s17, 4  ;;  %p1741_p0 = scmp.ne.s32.totalorder %s2313_s1, %s1740_s21  ;;  %s41_s18 = int_to_ptr.vmem [resolvable:$true] %s40_s18 }
   0x8   :  { %p1744_p1 = scmp.lt.u32.totalorder %s1740_s21, %s2313_s1 }
   0xa   :  { %p1746_p2 = pnand %p1744_p1, %p1741_p0 }
   0xc   :  { %1749 = shalt.err (!%p1746_p2)
}
   0xd   :  { %s1750_s26 = scalar_lea.vmem %s41_s18, 1280  ;;  %p1755_p4 = scmp.lt.s32.totalorder %s41_s18, %s41_s18 }
   0xe   :  { %p1751_p3 = scmp.ne.s32.totalorder %s41_s18, %s1750_s26  ;;  %p1756_p5 = scmp.lt.s32.totalorder %s1750_s26, %s1750_s26 }
  0x10   :  { %p1757_p6 = por %p1756_p5, %p1755_p4 }
  0x12   :  { %p1758_p7 = pnand %p1757_p6, %p1751_p3 }
  0x14   :  { %1761 = shalt.err (!%p1758_p7)
}
  0x15   :  { %s2019_s27 = smov 256   ;;  %s2020_s28 = smov 16  }
  0x16   :  { %46 = dma.hbm_to_vmem [thread:$0]  %s2313_s1, 1280, %s41_s18, [#allocation6], %s2019_s27, %s2019_s27, %s2020_s28  }
  0x17   :  { %s2021_s12 = smov [#allocation8]   ;;  %s1762_s16 = scalar_lea.hbm %s2315_s3, 8192 }
  0x18   :  { %s62_s13 = sshll.u32 %s2021_s12, 4  ;;  %p1763_p8 = scmp.ne.s32.totalorder %s2315_s3, %s1762_s16  ;;  %s63_s13 = int_to_ptr.vmem [resolvable:$true] %s62_s13 }
  0x19   :  { %p1766_p9 = scmp.lt.u32.totalorder %s1762_s16, %s2315_s3 }
  0x1b   :  { %p1768_p10 = pnand %p1766_p9, %p1763_p8 }
  0x1d   :  { %1771 = shalt.err (!%p1768_p10)
}
  0x1e   :  { %s1772_s22 = scalar_lea.vmem %s63_s13, 8192  ;;  %p1777_p12 = scmp.lt.s32.totalorder %s63_s13, %s63_s13 }
  0x1f   :  { %p1773_p11 = scmp.ne.s32.totalorder %s63_s13, %s1772_s22  ;;  %p1778_p13 = scmp.lt.s32.totalorder %s1772_s22, %s1772_s22 }
  0x21   :  { %p1779_p0 = por %p1778_p13, %p1777_p12 }
  0x23   :  { %p1780_p1 = pnand %p1779_p0, %p1773_p11 }
  0x25   :  { %1783 = shalt.err (!%p1780_p1)
}
  0x26   :  { %68 = dma.hbm_to_vmem [thread:$0]  %s2315_s3, 8192, %s63_s13, [#allocation9], %s2019_s27, %s2019_s27, %s2020_s28  }
  0x27   :  { %s2022_s23 = smov [#allocation11]   ;;  %s2023_s25 = smov [#allocation14]  }
  0x28   :  { %s84_s24 = sshll.u32 %s2022_s23, 4  ;;  %s106_s26 = sshll.u32 %s2023_s25, 4  ;;  %s85_s24 = int_to_ptr.vmem [resolvable:$true] %s84_s24  ;;  %s2122_s26 = int_to_ptr.vmem [resolvable:$true] %s106_s26 }
  0x29   :  { %s1784_s12 = scalar_lea.hbm %s2317_s5, 2048 }
  0x2a   :  { %p1785_p2 = scmp.ne.s32.totalorder %s2317_s5, %s1784_s12  ;;  %p1788_p3 = scmp.lt.u32.totalorder %s1784_s12, %s2317_s5 }
  0x2c   :  { %p1790_p4 = pnand %p1788_p3, %p1785_p2 }
  0x2e   :  { %1793 = shalt.err (!%p1790_p4)
}
  0x2f   :  { %s1794_s3 = scalar_lea.vmem %s85_s24, 2048  ;;  %p1799_p6 = scmp.lt.s32.totalorder %s85_s24, %s85_s24 }
  0x30   :  { %p1795_p5 = scmp.ne.s32.totalorder %s85_s24, %s1794_s3  ;;  %p1800_p7 = scmp.lt.s32.totalorder %s1794_s3, %s1794_s3 }
  0x32   :  { %p1801_p8 = por %p1800_p7, %p1799_p6 }
  0x34   :  { %p1802_p9 = pnand %p1801_p8, %p1795_p5 }
  0x36   :  { %1805 = shalt.err (!%p1802_p9)
}
  0x37   :  { %s2024_s27 = smov 64   ;;  %s2025_s28 = smov 4  }
  0x38   :  { %90 = dma.hbm_to_vmem [thread:$0]  %s2317_s5, 2048, %s85_s24, [#allocation12], %s2024_s27, %s2024_s27, %s2025_s28  }
  0x39   :  { %s1806_s22 = scalar_lea.hbm %s2319_s7, 2048 }
  0x3a   :  { %p1807_p10 = scmp.ne.s32.totalorder %s2319_s7, %s1806_s22  ;;  %p1810_p11 = scmp.lt.u32.totalorder %s1806_s22, %s2319_s7 }
  0x3c   :  { %p1812_p12 = pnand %p1810_p11, %p1807_p10 }
  0x3e   :  { %1815 = shalt.err (!%p1812_p12)
}
  0x3f   :  { %s1816_s29 = scalar_lea.vmem %s2122_s26, 2048  ;;  %p1821_p0 = scmp.lt.s32.totalorder %s2122_s26, %s2122_s26 }
  0x40   :  { %p1817_p13 = scmp.ne.s32.totalorder %s2122_s26, %s1816_s29  ;;  %p1822_p1 = scmp.lt.s32.totalorder %s1816_s29, %s1816_s29 }
  0x42   :  { %p1823_p2 = por %p1822_p1, %p1821_p0 }
  0x44   :  { %p1824_p3 = pnand %p1823_p2, %p1817_p13 }
  0x46   :  { %1827 = shalt.err (!%p1824_p3)
}
  0x47   :  { %s2026_s5 = smov 128   ;;  %s2027_s24 = smov 8  }
  0x48   :  { %112 = dma.hbm_to_vmem [thread:$0]  %s2319_s7, 2048, %s2122_s26, [#allocation15], %s2026_s5, %s2026_s5, %s2027_s24  }
  0x49   :  { %s2028_s14 = smov [#allocation17]   ;;  %s2029_s16 = smov [#allocation2]  }
  0x4a   :  { %s128_s15 = sshll.u32 %s2028_s14, 4  ;;  %s28_s17 = sshll.u32 %s2029_s16, 4  ;;  %s129_s15 = int_to_ptr.vmem [resolvable:$true] %s128_s15  ;;  %s2159_s17 = int_to_ptr.vmem [resolvable:$true] %s28_s17 }
  0x4b   :  { %s1828_s19 = scalar_lea.hbm %s2321_s9, 1280 }
  0x4c   :  { %p1829_p4 = scmp.ne.s32.totalorder %s2321_s9, %s1828_s19  ;;  %p1832_p5 = scmp.lt.u32.totalorder %s1828_s19, %s2321_s9 }
  0x4e   :  { %p1834_p6 = pnand %p1832_p5, %p1829_p4 }
  0x50   :  { %1837 = shalt.err (!%p1834_p6)
}
  0x51   :  { %s1838_s7 = scalar_lea.vmem %s129_s15, 1280  ;;  %p1843_p8 = scmp.lt.s32.totalorder %s129_s15, %s129_s15 }
  0x52   :  { %p1839_p7 = scmp.ne.s32.totalorder %s129_s15, %s1838_s7  ;;  %p1844_p9 = scmp.lt.s32.totalorder %s1838_s7, %s1838_s7 }
  0x54   :  { %p1845_p10 = por %p1844_p9, %p1843_p8 }
  0x56   :  { %p1846_p11 = pnand %p1845_p10, %p1839_p7 }
  0x58   :  { %1849 = shalt.err (!%p1846_p11)
}
  0x59   :  { %134 = dma.hbm_to_vmem [thread:$0]  %s2321_s9, 1280, %s129_s15, [#allocation18], %s2024_s27, %s2024_s27, %s2025_s28  }
  0x5a   :  { %s1850_s29 = scalar_lea.hbm %s2312_s0, 128 }
  0x5b   :  { %p1851_p12 = scmp.ne.s32.totalorder %s2312_s0, %s1850_s29  ;;  %p1854_p13 = scmp.lt.u32.totalorder %s1850_s29, %s2312_s0 }
  0x5d   :  { %p1856_p0 = pnand %p1854_p13, %p1851_p12 }
  0x5f   :  { %1859 = shalt.err (!%p1856_p0)
}
  0x60   :  { %s1860_s3 = scalar_lea.vmem %s2159_s17, 128  ;;  %p1865_p2 = scmp.lt.s32.totalorder %s2159_s17, %s2159_s17 }
  0x61   :  { %p1861_p1 = scmp.ne.s32.totalorder %s2159_s17, %s1860_s3  ;;  %p1866_p3 = scmp.lt.s32.totalorder %s1860_s3, %s1860_s3 }
  0x63   :  { %p1867_p4 = por %p1866_p3, %p1865_p2 }
  0x65   :  { %p1868_p5 = pnand %p1867_p4, %p1861_p1 }
  0x67   :  { %1871 = shalt.err (!%p1868_p5)
}
  0x68   :  { %34 = dma.hbm_to_vmem [thread:$0]  %s2312_s0, 128, %s2159_s17, [#allocation3], %s2024_s27, %s2024_s27, %s2025_s28  }
  0x69   :  { %s2030_s13 = smov [#allocation7]   ;;  %s2031_s20 = smov [#allocation10]  }
  0x6a   :  { %s53_s19 = sshll.u32 %s2030_s13, 4  ;;  %s75_s21 = sshll.u32 %s2031_s20, 4  ;;  %s54_s19 = int_to_ptr.vmem [resolvable:$true] %s53_s19  ;;  %s76_s21 = int_to_ptr.vmem [resolvable:$true] %s75_s21 }
  0x6b   :  { %s1872_s7 = scalar_lea.hbm %s2314_s2, 64 }
  0x6c   :  { %p1873_p6 = scmp.ne.s32.totalorder %s2314_s2, %s1872_s7  ;;  %p1876_p7 = scmp.lt.u32.totalorder %s1872_s7, %s2314_s2 }
  0x6e   :  { %p1878_p8 = pnand %p1876_p7, %p1873_p6 }
  0x70   :  { %1881 = shalt.err (!%p1878_p8)
}
  0x71   :  { %s1882_s0 = scalar_lea.vmem %s54_s19, 64  ;;  %p1887_p10 = scmp.lt.s32.totalorder %s54_s19, %s54_s19 }
  0x72   :  { %p1883_p9 = scmp.ne.s32.totalorder %s54_s19, %s1882_s0  ;;  %p1888_p11 = scmp.lt.s32.totalorder %s1882_s0, %s1882_s0 }
  0x74   :  { %p1889_p12 = por %p1888_p11, %p1887_p10 }
  0x76   :  { %p1890_p13 = pnand %p1889_p12, %p1883_p9 }
  0x78   :  { %1893 = shalt.err (!%p1890_p13)
}
  0x79   :  { %56 = dma.hbm_to_vmem [thread:$0]  %s2314_s2, 64, %s54_s19, [#allocation6]  }
  0x7a   :  { %s1894_s30 = scalar_lea.hbm %s2316_s4, 64 }
  0x7b   :  { %p1895_p0 = scmp.ne.s32.totalorder %s2316_s4, %s1894_s30  ;;  %p1898_p1 = scmp.lt.u32.totalorder %s1894_s30, %s2316_s4 }
  0x7d   :  { %p1900_p2 = pnand %p1898_p1, %p1895_p0 }
  0x7f   :  { %1903 = shalt.err (!%p1900_p2)
}
  0x80   :  { %s1904_s9 = scalar_lea.vmem %s76_s21, 64  ;;  %p1909_p4 = scmp.lt.s32.totalorder %s76_s21, %s76_s21 }
  0x81   :  { %p1905_p3 = scmp.ne.s32.totalorder %s76_s21, %s1904_s9  ;;  %p1910_p5 = scmp.lt.s32.totalorder %s1904_s9, %s1904_s9 }
  0x83   :  { %p1911_p6 = por %p1910_p5, %p1909_p4 }
  0x85   :  { %p1912_p7 = pnand %p1911_p6, %p1905_p3 }
  0x87   :  { %1915 = shalt.err (!%p1912_p7)
}
  0x88   :  { %78 = dma.hbm_to_vmem [thread:$0]  %s2316_s4, 64, %s76_s21, [#allocation9]  }
  0x89   :  { %s2032_s13 = smov [#allocation13]   ;;  %s2033_s20 = smov [#allocation16]  }
  0x8a   :  { %s97_s19 = sshll.u32 %s2032_s13, 4  ;;  %s119_s22 = sshll.u32 %s2033_s20, 4  ;;  %s98_s19 = int_to_ptr.vmem [resolvable:$true] %s97_s19  ;;  %s120_s22 = int_to_ptr.vmem [resolvable:$true] %s119_s22 }
  0x8b   :  { %s1916_s26 = scalar_lea.hbm %s2318_s6, 16 }
  0x8c   :  { %p1917_p8 = scmp.ne.s32.totalorder %s2318_s6, %s1916_s26  ;;  %p1920_p9 = scmp.lt.u32.totalorder %s1916_s26, %s2318_s6 }
  0x8e   :  { %p1922_p10 = pnand %p1920_p9, %p1917_p8 }
  0x90   :  { %1925 = shalt.err (!%p1922_p10)
}
  0x91   :  { %s1926_s4 = scalar_lea.vmem %s98_s19, 16  ;;  %s1930_s21 = scalar_lea.vmem %s98_s19, 32 }
  0x92   :  { %p1927_p11 = scmp.ne.s32.totalorder %s98_s19, %s1926_s4  ;;  %p1931_p12 = scmp.lt.s32.totalorder %s98_s19, %s98_s19 }
  0x93   :  { %p1932_p13 = scmp.lt.s32.totalorder %s1930_s21, %s1926_s4 }
  0x95   :  { %p1933_p0 = por %p1932_p13, %p1931_p12 }
  0x97   :  { %p1934_p1 = pnand %p1933_p0, %p1927_p11 }
  0x99   :  { %1937 = shalt.err (!%p1934_p1)
}
  0x9a   :  { %100 = dma.hbm_to_vmem [thread:$0]  %s2318_s6, 16, %s98_s19, [#allocation12]  }
  0x9b   :  { %s1938_s30 = scalar_lea.hbm %s2320_s8, 32 }
  0x9c   :  { %p1939_p2 = scmp.ne.s32.totalorder %s2320_s8, %s1938_s30  ;;  %p1942_p3 = scmp.lt.u32.totalorder %s1938_s30, %s2320_s8 }
  0x9e   :  { %p1944_p4 = pnand %p1942_p3, %p1939_p2 }
  0xa0   :  { %1947 = shalt.err (!%p1944_p4)
}
  0xa1   :  { %s1948_s9 = scalar_lea.vmem %s120_s22, 32  ;;  %p1953_p6 = scmp.lt.s32.totalorder %s120_s22, %s120_s22 }
  0xa2   :  { %p1949_p5 = scmp.ne.s32.totalorder %s120_s22, %s1948_s9  ;;  %p1954_p7 = scmp.lt.s32.totalorder %s1948_s9, %s1948_s9 }
  0xa4   :  { %p1955_p8 = por %p1954_p7, %p1953_p6 }
  0xa6   :  { %p1956_p9 = pnand %p1955_p8, %p1949_p5 }
  0xa8   :  { %1959 = shalt.err (!%p1956_p9)
}
  0xa9   :  { %122 = dma.hbm_to_vmem [thread:$0]  %s2320_s8, 32, %s120_s22, [#allocation15]  }
  0xaa   :  { %s2034_s15 = smov [#allocation19]   ;;  %s1960_s1 = scalar_lea.hbm %s2322_s10, 16 }
  0xab   :  { %s141_s13 = sshll.u32 %s2034_s15, 4  ;;  %p1961_p10 = scmp.ne.s32.totalorder %s2322_s10, %s1960_s1  ;;  %s142_s13 = int_to_ptr.vmem [resolvable:$true] %s141_s13 }
  0xac   :  { %p1964_p11 = scmp.lt.u32.totalorder %s1960_s1, %s2322_s10 }
  0xae   :  { %p1966_p12 = pnand %p1964_p11, %p1961_p10 }
  0xb0   :  { %1969 = shalt.err (!%p1966_p12)
}
  0xb1   :  { %s1970_s25 = scalar_lea.vmem %s142_s13, 16  ;;  %s1974_s8 = scalar_lea.vmem %s142_s13, 32 }
  0xb2   :  { %p1971_p13 = scmp.ne.s32.totalorder %s142_s13, %s1970_s25  ;;  %p1975_p0 = scmp.lt.s32.totalorder %s142_s13, %s142_s13 }
  0xb3   :  { %p1976_p1 = scmp.lt.s32.totalorder %s1974_s8, %s1970_s25 }
  0xb5   :  { %p1977_p2 = por %p1976_p1, %p1975_p0 }
  0xb7   :  { %p1978_p3 = pnand %p1977_p2, %p1971_p13 }
  0xb9   :  { %1981 = shalt.err (!%p1978_p3)
}
  0xba   :  { %144 = dma.hbm_to_vmem [thread:$0]  %s2322_s10, 16, %s142_s13, [#allocation18]  }
  0xbb   :  { %2004 = dma.done.wait [#allocation3], 128  }
  0xbc   :  { %2005 = vsyncadd [#allocation3], 4294967168 }
  0xbd   :  { %2006 = dma.done.wait [#allocation6], 1344  }
  0xbe   :  { %2007 = vsyncadd [#allocation6], 4294965952 }
  0xbf   :  { %2008 = dma.done.wait [#allocation9], 8256  }
  0xc0   :  { %2009 = vsyncadd [#allocation9], 4294959040 }
  0xc1   :  { %2010 = dma.done.wait [#allocation12], 2064  }
  0xc2   :  { %2011 = vsyncadd [#allocation12], 4294965232 }
  0xc3   :  { %2012 = dma.done.wait [#allocation15], 2080  }
  0xc4   :  { %2013 = vsyncadd [#allocation15], 4294965216 }
  0xc5   :  { %2014 = dma.done.wait [#allocation18], 1296  }
  0xc6   :  { %2015 = vsyncadd [#allocation18], 4294966000  ;;  %v2035_v0 = vmov 0   ;;  %vm272_vm0 = vcmask 1040384   ;;  %vm273_vm1 = vcmask 1041408   ;;  %v2036_v1 = vmov 65535  }
  0xc7   :  { %320 = vmatprep.mubr.bf16.mxu1 %v2035_v0  ;;  %v274_v2 = vsel %vm272_vm0, 4294967295, %v2036_v1  ;;  %v1569_v3 = vld [vmem:[#allocation5 + $0x4] ss:$16 sps:$4 sm:$0xff]   ;;  %v1571_v4 = vld [vmem:[#allocation5] ss:$16 sps:$4 sm:$0xff]   ;;  %v1577_v14 = vld [vmem:[#allocation2] sm:$0xff]  }
  0xc8   :  { %288 = vmatprep.subr.bf16.mxu1 %v1569_v3  ;;  %v1572_v5 = vld [vmem:[#allocation5 + $0x24] ss:$16 sps:$4 sm:$0xff]   ;;  %v275_v7 = vsel %vm273_vm1, %v274_v2, 0  ;;  %v1574_v8 = vld [vmem:[#allocation5 + $0x20] ss:$16 sps:$4 sm:$0xff]   ;;  %vm268_vm2 = vcmask 285696  }
  0xc9   :  { %v189_v6 = vld [vmem:[#allocation5 + $0x40] sm:$0x33]  ;;  %289 = vmatpush1.bf16.msra.mxu1 %v1571_v4  ;;  %v1586_v13 = vld [vmem:[#allocation8 + $0x4] ss:$16 sps:$4 sm:$0xff]   ;;  %v1580_v15 = vld [vmem:[#allocation5 + $0xc] ss:$16 sps:$4 sm:$0xff]  }
  0xca   :  { %v1411_v9 = vcombine.high %v189_v6, %v189_v6  ;;  %v1410_v10 = vcombine.low %v189_v6, %v189_v6  ;;  %290 = vmatprep.subr.bf16.mxu1 %v1572_v5  ;;  %v190_v16 = vld [vmem:[#allocation5 + $0x48] sm:$0x33]  ;;  %794 = vmatprep.subr.bf16.mxu0 %v1586_v13  ;;  %v1591_v17 = vld [vmem:[#allocation8] ss:$16 sps:$4 sm:$0xff]   ;;  %v1590_v30 = vld [vmem:[#allocation8 + $0xc] ss:$16 sps:$4 sm:$0xff]  }
  0xcb   :  { %v1592_v18 = vld [vmem:[#allocation8 + $0x24] ss:$16 sps:$4 sm:$0xff]   ;;  %v1583_v20 = vld [vmem:[#allocation5 + $0x2c] ss:$16 sps:$4 sm:$0xff]   ;;  %795 = vmatpush1.bf16.msra.mxu0 %v1591_v17  ;;  %v1413_v21 = vcombine.high %v190_v16, %v190_v16  ;;  %v1597_v22 = vld [vmem:[#allocation8 + $0x20] ss:$16 sps:$4 sm:$0xff]   ;;  %v1412_v25 = vcombine.low %v190_v16, %v190_v16 }
  0xcc   :  { %v280_v11 = vand.u32 %v1411_v9, %v275_v7  ;;  %v277_v12 = vand.u32 %v1410_v10, %v275_v7  ;;  %v1578_v19 = vld [vmem:[#allocation5 + $0x8] ss:$16 sps:$4 sm:$0xff]   ;;  %796 = vmatprep.subr.bf16.mxu0 %v1592_v18  ;;  %v1603_v27 = vld [vmem:[#allocation8 + $0x40] ss:$16 sps:$4 sm:$0xff]   ;;  %v1588_v33 = vld [vmem:[#allocation8 + $0x8] ss:$16 sps:$4 sm:$0xff]  }
  0xcd   :  { %291 = vmatpush1.bf16.msra.mxu1 %v1574_v8  ;;  %v1598_v23 = vld [vmem:[#allocation8 + $0x44] ss:$16 sps:$4 sm:$0xff]   ;;  %v286_v26 = vand.u32 %v1413_v21, %v275_v7  ;;  %v283_v29 = vand.u32 %v1412_v25, %v275_v7  ;;  %v1609_v31 = vld [vmem:[#allocation8 + $0x60] ss:$16 sps:$4 sm:$0xff]   ;;  %v1596_v34 = vld [vmem:[#allocation8 + $0x2c] ss:$16 sps:$4 sm:$0xff]   ;;  %v193_v25 = vlaneseq }
  0xce   :  { %292 = vmatprep.subr.bf16.mxu1 %v280_v11  ;;  %v1581_v24 = vld [vmem:[#allocation5 + $0x28] ss:$16 sps:$4 sm:$0xff]   ;;  %v1615_v35 = vld [vmem:[#allocation8 + $0x80] ss:$16 sps:$4 sm:$0xff]   ;;  %v1594_v37 = vld [vmem:[#allocation8 + $0x28] ss:$16 sps:$4 sm:$0xff]  }
  0xcf   :  { %797 = vmatpush1.bf16.msra.mxu0 %v1597_v22  ;;  %v1604_v28 = vld [vmem:[#allocation8 + $0x64] ss:$16 sps:$4 sm:$0xff]   ;;  %v1602_v38 = vld [vmem:[#allocation8 + $0x4c] ss:$16 sps:$4 sm:$0xff]   ;;  %v1621_v39 = vld [vmem:[#allocation8 + $0xa0] ss:$16 sps:$4 sm:$0xff]  }
  0xd0   :  { %798 = vmatprep.subr.bf16.mxu0 %v1598_v23  ;;  %v1610_v32 = vld [vmem:[#allocation8 + $0x84] ss:$16 sps:$4 sm:$0xff]   ;;  %v1600_v41 = vld [vmem:[#allocation8 + $0x48] ss:$16 sps:$4 sm:$0xff]   ;;  %v1608_v42 = vld [vmem:[#allocation8 + $0x6c] ss:$16 sps:$4 sm:$0xff]  }
  0xd1   :  { %293 = vmatpush1.bf16.msra.mxu1 %v277_v12  ;;  %v1616_v36 = vld [vmem:[#allocation8 + $0xa4] ss:$16 sps:$4 sm:$0xff]   ;;  %v1627_v43 = vld [vmem:[#allocation8 + $0xc0] ss:$16 sps:$4 sm:$0xff]   ;;  %v1606_v44 = vld [vmem:[#allocation8 + $0x68] ss:$16 sps:$4 sm:$0xff]  }
  0xd2   :  { %331 = vmatprep.subr.bf16.mxu1 %v1580_v15  ;;  %v1622_v40 = vld [vmem:[#allocation8 + $0xc4] ss:$16 sps:$4 sm:$0xff]   ;;  %v1614_v46 = vld [vmem:[#allocation8 + $0x8c] ss:$16 sps:$4 sm:$0xff]   ;;  %v1633_v47 = vld [vmem:[#allocation8 + $0xe0] ss:$16 sps:$4 sm:$0xff]  }
  0xd3   :  { %799 = vmatpush1.bf16.msra.mxu0 %v1603_v27  ;;  %v1628_v45 = vld [vmem:[#allocation8 + $0xe4] ss:$16 sps:$4 sm:$0xff]   ;;  %v1612_v49 = vld [vmem:[#allocation8 + $0x88] ss:$16 sps:$4 sm:$0xff]   ;;  %v1620_v50 = vld [vmem:[#allocation8 + $0xac] ss:$16 sps:$4 sm:$0xff]  }
  0xd4   :  { %1414 = vmatmul.mubr.msk.bf16.vlgmr.msra.gmra.mrb[0].mxu1 %vm268_vm2, %v1577_v14  ;;  %800 = vmatprep.subr.bf16.mxu0 %v1604_v28  ;;  %v1634_v48 = vld [vmem:[#allocation8 + $0x104] ss:$16 sps:$4 sm:$0xff]   ;;  %v1639_v51 = vld [vmem:[#allocation8 + $0x100] ss:$16 sps:$4 sm:$0xff]   ;;  %v1618_v53 = vld [vmem:[#allocation8 + $0xa8] ss:$16 sps:$4 sm:$0xff]  }
  0xd5   :  { %332 = vmatpush1.bf16.msra.mxu1 %v1578_v19  ;;  %363 = vmatprep.mubr.bf16.mxu1 %v2035_v0  ;;  %v1640_v52 = vld [vmem:[#allocation8 + $0x124] ss:$16 sps:$4 sm:$0xff]   ;;  %v1626_v54 = vld [vmem:[#allocation8 + $0xcc] ss:$16 sps:$4 sm:$0xff]   ;;  %v1645_v55 = vld [vmem:[#allocation8 + $0x120] ss:$16 sps:$4 sm:$0xff]  }
  0xd6   :  { %333 = vmatprep.subr.bf16.mxu1 %v1583_v20  ;;  %v1624_v56 = vld [vmem:[#allocation8 + $0xc8] ss:$16 sps:$4 sm:$0xff]   ;;  %v1632_v57 = vld [vmem:[#allocation8 + $0xec] ss:$16 sps:$4 sm:$0xff]   ;;  %v1646_v63 = vld [vmem:[#allocation8 + $0x144] ss:$16 sps:$4 sm:$0xff]  }
  0xd7   :  { %801 = vmatpush1.bf16.msra.mxu0 %v1609_v31  ;;  %v1630_v58 = vld [vmem:[#allocation8 + $0xe8] ss:$16 sps:$4 sm:$0xff]   ;;  %v1638_v59 = vld [vmem:[#allocation8 + $0x10c] ss:$16 sps:$4 sm:$0xff]   ;;  %v1651_v3 = vld [vmem:[#allocation8 + $0x140] ss:$16 sps:$4 sm:$0xff]  }
  0xd8   :  { %802 = vmatprep.subr.bf16.mxu0 %v1610_v32  ;;  %v1636_v60 = vld [vmem:[#allocation8 + $0x108] ss:$16 sps:$4 sm:$0xff]   ;;  %v1644_v61 = vld [vmem:[#allocation8 + $0x12c] ss:$16 sps:$4 sm:$0xff]   ;;  %v1652_v4 = vld [vmem:[#allocation8 + $0x164] ss:$16 sps:$4 sm:$0xff]  }
  0xd9   :  { %334 = vmatpush1.bf16.msra.mxu1 %v1581_v24  ;;  %v1642_v62 = vld [vmem:[#allocation8 + $0x128] ss:$16 sps:$4 sm:$0xff]   ;;  %v1650_v1 = vld [vmem:[#allocation8 + $0x14c] ss:$16 sps:$4 sm:$0xff]   ;;  %v1657_v7 = vld [vmem:[#allocation8 + $0x160] ss:$16 sps:$4 sm:$0xff]  }
  0xda   :  { %335 = vmatprep.subr.bf16.mxu1 %v286_v26  ;;  %v1648_v2 = vld [vmem:[#allocation8 + $0x148] ss:$16 sps:$4 sm:$0xff]   ;;  %v1656_v5 = vld [vmem:[#allocation8 + $0x16c] ss:$16 sps:$4 sm:$0xff]   ;;  %v1658_v8 = vld [vmem:[#allocation8 + $0x184] ss:$16 sps:$4 sm:$0xff]  }
  0xdb   :  { %803 = vmatpush1.bf16.msra.mxu0 %v1615_v35  ;;  %v1654_v6 = vld [vmem:[#allocation8 + $0x168] ss:$16 sps:$4 sm:$0xff]   ;;  %v1662_v10 = vld [vmem:[#allocation8 + $0x18c] ss:$16 sps:$4 sm:$0xff]   ;;  %v1663_v11 = vld [vmem:[#allocation8 + $0x180] ss:$16 sps:$4 sm:$0xff]  }
  0xdc   :  { %804 = vmatprep.subr.bf16.mxu0 %v1616_v36  ;;  %v1660_v9 = vld [vmem:[#allocation8 + $0x188] ss:$16 sps:$4 sm:$0xff]   ;;  %v1664_v12 = vld [vmem:[#allocation8 + $0x1a4] ss:$16 sps:$4 sm:$0xff]   ;;  %v1668_v13 = vld [vmem:[#allocation8 + $0x1ac] ss:$16 sps:$4 sm:$0xff]  }
  0xdd   :  { %336 = vmatpush1.bf16.msra.mxu1 %v283_v29  ;;  %v1669_v15 = vld [vmem:[#allocation8 + $0x1a0] ss:$16 sps:$4 sm:$0xff]   ;;  %v1670_v16 = vld [vmem:[#allocation8 + $0x1c4] ss:$16 sps:$4 sm:$0xff]   ;;  %v1674_v17 = vld [vmem:[#allocation8 + $0x1cc] ss:$16 sps:$4 sm:$0xff]  }
  0xde   :  { %837 = vmatprep.subr.bf16.mxu1 %v1590_v30  ;;  %v1672_v18 = vld [vmem:[#allocation8 + $0x1c8] ss:$16 sps:$4 sm:$0xff]   ;;  %v1675_v19 = vld [vmem:[#allocation8 + $0x1c0] ss:$16 sps:$4 sm:$0xff]   ;;  %v1676_v20 = vld [vmem:[#allocation8 + $0x1e4] ss:$16 sps:$4 sm:$0xff]  }
  0xdf   :  { %805 = vmatpush1.bf16.msra.mxu0 %v1621_v39  ;;  %v1680_v21 = vld [vmem:[#allocation8 + $0x1ec] ss:$16 sps:$4 sm:$0xff]   ;;  %v1678_v22 = vld [vmem:[#allocation8 + $0x1e8] ss:$16 sps:$4 sm:$0xff]   ;;  %v1681_v23 = vld [vmem:[#allocation8 + $0x1e0] ss:$16 sps:$4 sm:$0xff]  }
  0xe0   :  { %1415 = vmatmul.mubr.msk.bf16.vlgmr.msra.gmra.mrb[4].mxu1 %vm268_vm2, %v1577_v14  ;;  %806 = vmatprep.subr.bf16.mxu0 %v1622_v40  ;;  %v1666_v14 = vld [vmem:[#allocation8 + $0x1a8] ss:$16 sps:$4 sm:$0xff]   ;;  %v2261_v26 = vshrl.u32 %v193_v25, 7  ;;  %v191_v32 = vld [vmem:[#allocation7] sm:$0xf]  ;;  %vm1315_vm3 = vcmask 261120  }
  0xe1   :  { %838 = vmatpush1.bf16.msra.mxu1 %v1588_v33  ;;  %v1682_v24 = vld [vmem:[#allocation11 + $0x40] sm:$0xff]   ;;  %s2037_s10 = smov [#allocation20]  }
  0xe2   :  { %839 = vmatprep.subr.bf16.mxu1 %v1596_v34  ;;  %v2264_v30 = vsub.s32 0, %v2261_v26  ;;  %v2267_v33 = vsub.s32 1, %v2261_v26  ;;  %v203_v34 = vsub.s32 2, %v2261_v26  ;;  %v207_v35 = vsub.s32 3, %v2261_v26  ;;  %s1384_s4 = sshll.u32 %s2037_s10, 4  ;;  %s1385_s4 = int_to_ptr.vmem [resolvable:$true] %s1384_s4 }
  0xe3   :  { %807 = vmatpush1.bf16.msra.mxu0 %v1627_v43  ;;  %s1982_s21 = scalar_lea.vmem %s1385_s4, 256  ;;  %p1987_p5 = scmp.lt.s32.totalorder %s1385_s4, %s1385_s4 }
  0xe4   :  { %808 = vmatprep.subr.bf16.mxu0 %v1628_v45  ;;  %v196_v36 = vrot.slane %v191_v32, %v2264_v30  ;;  %v208_v39 = vrot.slane %v191_v32, %v207_v35  ;;  %p1983_p4 = scmp.ne.s32.totalorder %s1385_s4, %s1982_s21  ;;  %p1988_p6 = scmp.lt.s32.totalorder %s1982_s21, %s1982_s21 }
  0xe5   :  { %840 = vmatpush1.bf16.msra.mxu1 %v1594_v37  ;;  %v200_v37 = vrot.slane %v191_v32, %v2267_v33 }
  0xe6   :  { %841 = vmatprep.subr.bf16.mxu1 %v1602_v38  ;;  %v204_v38 = vrot.slane %v191_v32, %v203_v34  ;;  %v1713_v32 = vld [vmem:[#allocation14 + $0x50] ss:$8 sps:$4 sm:$0xff]   ;;  %p1989_p7 = por %p1988_p6, %p1987_p5 }
  0xe7   :  { %809 = vmatpush1.bf16.msra.mxu0 %v1633_v47 }
  0xe8   :  { %810 = vmatprep.subr.bf16.mxu0 %v1634_v48  ;;  %p1990_p8 = pnand %p1989_p7, %p1983_p4 }
  0xe9   :  { %842 = vmatpush1.bf16.msra.mxu1 %v1600_v41 }
  0xea   :  { %843 = vmatprep.subr.bf16.mxu1 %v1608_v42 }
  0xeb   :  { %811 = vmatpush1.bf16.msra.mxu0 %v1639_v51 }
  0xec   :  { %812 = vmatprep.subr.bf16.mxu0 %v1640_v52 }
  0xed   :  { %844 = vmatpush1.bf16.msra.mxu1 %v1606_v44 }
  0xee   :  { %845 = vmatprep.subr.bf16.mxu1 %v1614_v46 }
  0xef   :  { %813 = vmatpush1.bf16.msra.mxu0 %v1645_v55 }
  0xf0   :  { %814 = vmatprep.subr.bf16.mxu0 %v1646_v63 }
  0xf1   :  { %846 = vmatpush1.bf16.msra.mxu1 %v1612_v49 }
  0xf2   :  { %847 = vmatprep.subr.bf16.mxu1 %v1620_v50 }
  0xf3   :  { %815 = vmatpush1.bf16.msra.mxu0 %v1651_v3  ;;  %v1683_v3 = vld [vmem:[#allocation11] sm:$0xff]  }
  0xf4   :  { %816 = vmatprep.subr.bf16.mxu0 %v1652_v4  ;;  %v1684_v4 = vld [vmem:[#allocation11 + $0x48] sm:$0xff]  }
  0xf5   :  { %848 = vmatpush1.bf16.msra.mxu1 %v1618_v53 }
  0xf6   :  { %849 = vmatprep.subr.bf16.mxu1 %v1626_v54 }
  0xf7   :  { %817 = vmatpush1.bf16.msra.mxu0 %v1657_v7  ;;  %v1687_v7 = vld [vmem:[#allocation11 + $0x10] sm:$0xff]  }
  0xf8   :  { %818 = vmatprep.subr.bf16.mxu0 %v1658_v8  ;;  %v1688_v8 = vld [vmem:[#allocation11 + $0x58] sm:$0xff]  }
  0xf9   :  { %850 = vmatpush1.bf16.msra.mxu1 %v1624_v56 }
  0xfa   :  { %851 = vmatprep.subr.bf16.mxu1 %v1632_v57 }
  0xfb   :  { %819 = vmatpush1.bf16.msra.mxu0 %v1663_v11  ;;  %v1691_v11 = vld [vmem:[#allocation11 + $0x20] sm:$0xff]  }
  0xfc   :  { %820 = vmatprep.subr.bf16.mxu0 %v1664_v12  ;;  %v1692_v12 = vld [vmem:[#allocation11 + $0x68] sm:$0xff]  }
  0xfd   :  { %852 = vmatpush1.bf16.msra.mxu1 %v1630_v58 }
  0xfe   :  { %853 = vmatprep.subr.bf16.mxu1 %v1638_v59 }
  0xff   :  { %821 = vmatpush1.bf16.msra.mxu0 %v1669_v15  ;;  %v1695_v15 = vld [vmem:[#allocation11 + $0x30] sm:$0xff]  }
 0x100   :  { %822 = vmatprep.subr.bf16.mxu0 %v1670_v16  ;;  %v1696_v16 = vld [vmem:[#allocation11 + $0x78] sm:$0xff]  }
 0x101   :  { %854 = vmatpush1.bf16.msra.mxu1 %v1636_v60 }
 0x102   :  { %855 = vmatprep.subr.bf16.mxu1 %v1644_v61 }
 0x103   :  { %823 = vmatpush1.bf16.msra.mxu0 %v1675_v19  ;;  %v1700_v19 = vld [vmem:[#allocation14 + $0x4] ss:$8 sps:$4 sm:$0xff]  }
 0x104   :  { %824 = vmatprep.subr.bf16.mxu0 %v1676_v20  ;;  %v1703_v20 = vld [vmem:[#allocation14 + $0x14] ss:$8 sps:$4 sm:$0xff]  }
 0x105   :  { %856 = vmatpush1.bf16.msra.mxu1 %v1642_v62 }
 0x106   :  { %857 = vmatprep.subr.bf16.mxu1 %v1650_v1 }
 0x107   :  { %825 = vmatpush1.bf16.msra.mxu0 %v1681_v23  ;;  %v1704_v23 = vld [vmem:[#allocation14 + $0x20] ss:$8 sps:$4 sm:$0xff]  }
 0x108   :  { %1527 = vmatprep.subr.bf16.mxu0 %v1682_v24  ;;  %v1709_v24 = vld [vmem:[#allocation14 + $0x34] ss:$8 sps:$4 sm:$0xff]  }
 0x109   :  { %858 = vmatpush1.bf16.msra.mxu1 %v1648_v2 }
 0x10a   :  { %859 = vmatprep.subr.bf16.mxu1 %v1656_v5  ;;  %v1685_v5 = vld [vmem:[#allocation11 + $0x8] sm:$0xff]  }
 0x10d   :  { %860 = vmatpush1.bf16.msra.mxu1 %v1654_v6  ;;  %v1686_v6 = vld [vmem:[#allocation11 + $0x50] sm:$0xff]  }
 0x10e   :  { %861 = vmatprep.subr.bf16.mxu1 %v1662_v10  ;;  %v1690_v10 = vld [vmem:[#allocation11 + $0x60] sm:$0xff]  }
 0x111   :  { %862 = vmatpush1.bf16.msra.mxu1 %v1660_v9  ;;  %v1689_v9 = vld [vmem:[#allocation11 + $0x18] sm:$0xff]  }
 0x112   :  { %863 = vmatprep.subr.bf16.mxu1 %v1668_v13  ;;  %v1693_v13 = vld [vmem:[#allocation11 + $0x28] sm:$0xff]  }
 0x115   :  { %864 = vmatpush1.bf16.msra.mxu1 %v1666_v14  ;;  %v1694_v14 = vld [vmem:[#allocation11 + $0x70] sm:$0xff]  }
 0x116   :  { %865 = vmatprep.subr.bf16.mxu1 %v1674_v17  ;;  %v1697_v17 = vld [vmem:[#allocation11 + $0x38] sm:$0xff]  }
 0x119   :  { %866 = vmatpush1.bf16.msra.mxu1 %v1672_v18  ;;  %v1698_v18 = vld [vmem:[#allocation14] ss:$8 sps:$4 sm:$0xff]  }
 0x11a   :  { %867 = vmatprep.subr.bf16.mxu1 %v1680_v21  ;;  %v1701_v21 = vld [vmem:[#allocation14 + $0x10] ss:$8 sps:$4 sm:$0xff]  }
 0x11d   :  { %868 = vmatpush1.bf16.msra.mxu1 %v1678_v22  ;;  %v1706_v22 = vld [vmem:[#allocation14 + $0x24] ss:$8 sps:$4 sm:$0xff]  }
 0x11e   :  { %1179 = vmatprep.subr.bf16.mxu1 %v1700_v19 }
 0x1a7   :  { %v322_v27 = vpop.f32.mrb[0].mxu1 }
 0x1a8   :  { %v324_v28 = vpop.f32.mrb[1].mxu1  ;;  %v323_v40 = vadd.f32 %v322_v27, %v196_v36  ;;  %v1707_v27 = vld [vmem:[#allocation14 + $0x30] ss:$8 sps:$4 sm:$0xff]  }
 0x1a9   :  { %v326_v29 = vpop.f32.mrb[2].mxu1  ;;  %v325_v41 = vadd.f32 %v324_v28, %v200_v37  ;;  %v1712_v28 = vld [vmem:[#allocation14 + $0x44] ss:$8 sps:$4 sm:$0xff]  }
 0x1aa   :  { %v328_v31 = vpop.f32.mrb[3].mxu1  ;;  %v327_v43 = vadd.f32 %v326_v29, %v196_v36  ;;  %v374_v49 = vmax.f32 %v323_v40, 0.0  ;;  %v1710_v29 = vld [vmem:[#allocation14 + $0x40] ss:$8 sps:$4 sm:$0xff]   ;;  %v452_v36 = vld [vmem:[#allocation10] sm:$0xf] }
 0x1ab   :  { %v329_v46 = vadd.f32 %v328_v31, %v200_v37  ;;  %v375_v53 = vmax.f32 %v325_v41, 0.0  ;;  %v1715_v31 = vld [vmem:[#allocation14 + $0x54] ss:$8 sps:$4 sm:$0xff]   ;;  %v457_v37 = vrot.slane %v452_v36, %v2264_v30  ;;  %v469_v40 = vrot.slane %v452_v36, %v207_v35 }
 0x1ac   :  { %v378_v56 = vmax.f32 %v327_v43, 0.0 }
 0x1ad   :  { %v379_v59 = vmax.f32 %v329_v46, 0.0 }
 0x1b3   :  { %v365_v42 = vpop.f32.mrb[4].mxu1 }
 0x1b4   :  { %v366_v44 = vadd.f32 %v365_v42, %v204_v38  ;;  %v367_v45 = vpop.f32.mrb[5].mxu1 }
 0x1b5   :  { %v368_v47 = vadd.f32 %v367_v45, %v208_v39  ;;  %v369_v48 = vpop.f32.mrb[6].mxu1 }
 0x1b6   :  { %v376_v50 = vmax.f32 %v366_v44, 0.0  ;;  %v370_v51 = vadd.f32 %v369_v48, %v204_v38  ;;  %v371_v52 = vpop.f32.mrb[7].mxu1  ;;  %v465_v38 = vrot.slane %v452_v36, %v203_v34 }
 0x1b7   :  { %v377_v54 = vmax.f32 %v368_v47, 0.0  ;;  %v372_v55 = vadd.f32 %v371_v52, %v208_v39  ;;  %v461_v39 = vrot.slane %v452_v36, %v2267_v33 }
 0x1b8   :  { %v382_v57 = vmax.f32 %v374_v49, %v376_v50  ;;  %v380_v58 = vmax.f32 %v370_v51, 0.0 }
 0x1b9   :  { %v383_v60 = vmax.f32 %v375_v53, %v377_v54  ;;  %v381_v61 = vmax.f32 %v372_v55, 0.0 }
 0x1ba   :  { %v384_v62 = vmax.f32 %v378_v56, %v380_v58 }
 0x1bb   :  { %v385_v63 = vmax.f32 %v379_v59, %v381_v61 }
 0x1bc   :  { %v386_v1 = vpack.c.bf16 %v384_v62, %v382_v57 }
 0x1bd   :  { %v387_v2 = vpack.c.bf16 %v385_v63, %v383_v60 }
 0x1bf   :  { %826 = vmatprep.mubr.bf16.mxu0 %v387_v2  ;;  %869 = vmatprep.mubr.bf16.mxu1 %v387_v2 }
 0x1c0   :  { %827 = vmatmul.mubr.bf16.vlgmr.msra.gmra.mrb[0].mxu0 %v386_v1  ;;  %870 = vmatmul.mubr.bf16.vlgmr.msra.gmra.mrb[8].mxu1 %v386_v1 }
 0x1c1   :  { %1528 = vmatpush3.bf16.msra.mxu0 %v1683_v3  ;;  %1211 = vmatprep.mubr.bf16.mxu1 %v2035_v0 }
 0x1c2   :  { %1529 = vmatprep.subr.bf16.mxu0 %v1684_v4  ;;  %1180 = vmatpush1.bf16.msra.mxu1 %v1698_v18 }
 0x1c3   :  { %1181 = vmatprep.subr.bf16.mxu1 %v1703_v20  ;;  %v1480_v20 = vld [vmem:[#allocation13] ss:$0 sm:$0xff] }
 0x1c5   :  { %1530 = vmatpush3.bf16.msra.mxu0 %v1685_v5  ;;  %v1718_v5 = vld [vmem:[#allocation14 + $0x64] ss:$8 sps:$4 sm:$0xff]  }
 0x1c6   :  { %1531 = vmatprep.subr.bf16.mxu0 %v1686_v6  ;;  %1182 = vmatpush1.bf16.msra.mxu1 %v1701_v21  ;;  %v1716_v6 = vld [vmem:[#allocation14 + $0x60] ss:$8 sps:$4 sm:$0xff]  }
 0x1c7   :  { %1183 = vmatprep.subr.bf16.mxu1 %v1706_v22 }
 0x1c9   :  { %1532 = vmatpush3.bf16.msra.mxu0 %v1687_v7  ;;  %v1721_v7 = vld [vmem:[#allocation14 + $0x74] ss:$8 sps:$4 sm:$0xff]  }
 0x1ca   :  { %1533 = vmatprep.subr.bf16.mxu0 %v1688_v8  ;;  %1184 = vmatpush1.bf16.msra.mxu1 %v1704_v23  ;;  %v1719_v8 = vld [vmem:[#allocation14 + $0x70] ss:$8 sps:$4 sm:$0xff]  }
 0x1cb   :  { %1185 = vmatprep.subr.bf16.mxu1 %v1709_v24 }
 0x1cd   :  { %1534 = vmatpush3.bf16.msra.mxu0 %v1689_v9  ;;  %v1722_v9 = vld [vmem:[#allocation17] sm:$0xff]  }
 0x1ce   :  { %1535 = vmatprep.subr.bf16.mxu0 %v1690_v10  ;;  %1186 = vmatpush1.bf16.msra.mxu1 %v1707_v27  ;;  %v1723_v10 = vld [vmem:[#allocation17 + $0x8] sm:$0xff]  }
 0x1cf   :  { %1187 = vmatprep.subr.bf16.mxu1 %v1712_v28  ;;  %v1729_v28 = vld [vmem:[#allocation17 + $0x38] sm:$0xff]  }
 0x1d1   :  { %1536 = vmatpush3.bf16.msra.mxu0 %v1691_v11  ;;  %v1724_v11 = vld [vmem:[#allocation17 + $0x10] sm:$0xff]  }
 0x1d2   :  { %1537 = vmatprep.subr.bf16.mxu0 %v1692_v12  ;;  %1188 = vmatpush1.bf16.msra.mxu1 %v1710_v29  ;;  %v1725_v12 = vld [vmem:[#allocation17 + $0x18] sm:$0xff]   ;;  %v1730_v29 = vld [vmem:[#allocation17 + $0x40] sm:$0xff]  }
 0x1d3   :  { %1189 = vmatprep.subr.bf16.mxu1 %v1715_v31  ;;  %v1731_v31 = vld [vmem:[#allocation17 + $0x48] sm:$0xff]  }
 0x1d5   :  { %1538 = vmatpush3.bf16.msra.mxu0 %v1693_v13  ;;  %v1726_v13 = vld [vmem:[#allocation17 + $0x20] sm:$0xff]  }
 0x1d6   :  { %1539 = vmatprep.subr.bf16.mxu0 %v1694_v14  ;;  %1190 = vmatpush1.bf16.msra.mxu1 %v1713_v32  ;;  %v1727_v14 = vld [vmem:[#allocation17 + $0x28] sm:$0xff]   ;;  %v1087_v32 = vld [vmem:[#allocation16] sm:$0x3] }
 0x1d7   :  { %1191 = vmatprep.subr.bf16.mxu1 %v1718_v5  ;;  %v1092_v36 = vrot.slane %v1087_v32, %v2264_v30  ;;  %v1513_v30 = vld [vmem:[#allocation19] ss:$0 sm:$0xff] }
 0x1d9   :  { %1540 = vmatpush3.bf16.msra.mxu0 %v1695_v15  ;;  %v1728_v15 = vld [vmem:[#allocation17 + $0x30] sm:$0xff]  }
 0x1da   :  { %1541 = vmatprep.subr.bf16.mxu0 %v1696_v16  ;;  %1192 = vmatpush1.bf16.msra.mxu1 %v1716_v6 }
 0x1db   :  { %1193 = vmatprep.subr.bf16.mxu1 %v1721_v7 }
 0x1dd   :  { %1542 = vmatpush3.bf16.msra.mxu0 %v1697_v17 }
 0x1de   :  { %1319 = vmatprep.subr.bf16.mxu0 %v2035_v0  ;;  %1194 = vmatpush1.bf16.msra.mxu1 %v1719_v8 }
 0x293   :  { %v828_v41 = vpop.f32.mrb[0].mxu0  ;;  %v871_v42 = vpop.f32.mrb[8].mxu1 }
 0x294   :  { %v829_v43 = vadd.f32 %v828_v41, %v457_v37  ;;  %v872_v44 = vadd.f32 %v871_v42, %v465_v38  ;;  %v830_v45 = vpop.f32.mrb[1].mxu0  ;;  %v873_v46 = vpop.f32.mrb[9].mxu1 }
 0x295   :  { %v831_v47 = vadd.f32 %v830_v45, %v461_v39  ;;  %v874_v48 = vadd.f32 %v873_v46, %v469_v40  ;;  %v832_v49 = vpop.f32.mrb[2].mxu0  ;;  %v875_v50 = vpop.f32.mrb[10].mxu1 }
 0x296   :  { %v880_v51 = vmax.f32 %v829_v43, 0.0  ;;  %v882_v52 = vmax.f32 %v872_v44, 0.0  ;;  %v833_v53 = vadd.f32 %v832_v49, %v457_v37  ;;  %v876_v54 = vadd.f32 %v875_v50, %v465_v38  ;;  %v834_v34 = vpop.f32.mrb[3].mxu0  ;;  %v877_v55 = vpop.f32.mrb[11].mxu1 }
 0x297   :  { %v881_v56 = vmax.f32 %v831_v47, 0.0  ;;  %v883_v57 = vmax.f32 %v874_v48, 0.0  ;;  %v835_v26 = vadd.f32 %v834_v34, %v461_v39  ;;  %v878_v35 = vadd.f32 %v877_v55, %v469_v40 }
 0x298   :  { %v888_v58 = vmax.f32 %v880_v51, %v882_v52  ;;  %v884_v59 = vmax.f32 %v833_v53, 0.0  ;;  %v886_v60 = vmax.f32 %v876_v54, 0.0  ;;  %v1096_v37 = vrot.slane %v1087_v32, %v2267_v33 }
 0x299   :  { %v889_v61 = vmax.f32 %v881_v56, %v883_v57  ;;  %v885_v62 = vmax.f32 %v835_v26, 0.0  ;;  %v887_v63 = vmax.f32 %v878_v35, 0.0 }
 0x29a   :  { %v890_v1 = vmax.f32 %v884_v59, %v886_v60  ;;  %v1361_v59 = vand.u32 127, %v193_v25 }
 0x29b   :  { %v891_v2 = vmax.f32 %v885_v62, %v887_v63 }
 0x29c   :  { %v892_v3 = vpack.c.bf16 %v890_v1, %v888_v58  ;;  %vm1362_vm4 = vcmp.lt.s32.totalorder %v1361_v59, 64 }
 0x29d   :  { %v893_v4 = vpack.c.bf16 %v891_v2, %v889_v61 }
 0x29f   :  { %1061 = vmatprep.mubr.bf16.mxu0 %v893_v4 }
 0x2a0   :  { %1062 = vmatmul.mubr.bf16.vlgmr.msra.gmra.mrb[4].mxu0 %v892_v3 }
 0x2a1   :  { %1320 = vmatpush1.bf16.msra.mxu0 %v1722_v9 }
 0x2a2   :  { %1321 = vmatprep.subr.bf16.mxu0 %v2035_v0 }
 0x2a5   :  { %1322 = vmatpush1.bf16.msra.mxu0 %v1723_v10 }
 0x2a6   :  { %1323 = vmatprep.subr.bf16.mxu0 %v2035_v0 }
 0x2a9   :  { %1324 = vmatpush1.bf16.msra.mxu0 %v1724_v11 }
 0x2aa   :  { %1325 = vmatprep.subr.bf16.mxu0 %v2035_v0 }
 0x2ad   :  { %1326 = vmatpush1.bf16.msra.mxu0 %v1725_v12 }
 0x2ae   :  { %1327 = vmatprep.subr.bf16.mxu0 %v2035_v0 }
 0x2b1   :  { %1328 = vmatpush1.bf16.msra.mxu0 %v1726_v13 }
 0x2b2   :  { %1329 = vmatprep.subr.bf16.mxu0 %v2035_v0 }
 0x2b5   :  { %1330 = vmatpush1.bf16.msra.mxu0 %v1727_v14 }
 0x2b6   :  { %1331 = vmatprep.subr.bf16.mxu0 %v2035_v0 }
 0x2b9   :  { %1332 = vmatpush1.bf16.msra.mxu0 %v1728_v15 }
 0x2ba   :  { %1333 = vmatprep.subr.bf16.mxu0 %v2035_v0 }
 0x2bd   :  { %1334 = vmatpush1.bf16.msra.mxu0 %v1729_v28 }
 0x2be   :  { %1335 = vmatprep.subr.bf16.mxu0 %v2035_v0 }
 0x2c1   :  { %1336 = vmatpush1.bf16.msra.mxu0 %v1730_v29 }
 0x2c2   :  { %1337 = vmatprep.subr.bf16.mxu0 %v2035_v0 }
 0x2c5   :  { %1338 = vmatpush1.bf16.msra.mxu0 %v1731_v31 }
 0x373   :  { %v1543_v16 = vpop.f32.mrb[4].mxu0 }
 0x374   :  { %v1544_v17 = vpop.f32.mrb[5].mxu0 }
 0x375   :  { %v1545_v18 = vadd.f32 %v1544_v17, %v1543_v16  ;;  %v1546_v19 = vpop.f32.mrb[6].mxu0 }
 0x376   :  { %v1547_v21 = vpop.f32.mrb[7].mxu0 }
 0x377   :  { %v1548_v22 = vadd.f32 %v1547_v21, %v1546_v19  ;;  %v1064_v23 = vadd.f32 %v1545_v18, %v1480_v20 }
 0x379   :  { %v1067_v24 = vadd.f32 %v1548_v22, %v1480_v20 }
 0x37b   :  { %v1070_v27 = vpack.c.bf16 %v1067_v24, %v1064_v23 }
 0x37d   :  { %1212 = vmatmul.mubr.bf16.vlgmr.msra.gmra.mrb[12].mxu1 %v1070_v27 }
 0x450   :  { %v1213_v38 = vpop.f32.mrb[12].mxu1 }
 0x451   :  { %v1214_v39 = vadd.f32 %v1213_v38, %v1092_v36  ;;  %v1215_v40 = vpop.f32.mrb[13].mxu1 }
 0x452   :  { %v1216_v41 = vadd.f32 %v1215_v40, %v1096_v37  ;;  %v1217_v42 = vpop.f32.mrb[14].mxu1 }
 0x453   :  { %v1218_v43 = vadd.f32 %v1217_v42, %v1092_v36  ;;  %v1219_v44 = vpop.f32.mrb[15].mxu1  ;;  %v1222_v46 = vmax.f32 %v1214_v39, 0.0 }
 0x454   :  { %v1220_v45 = vadd.f32 %v1219_v44, %v1096_v37  ;;  %v1223_v48 = vmax.f32 %v1216_v41, 0.0 }
 0x455   :  { %v1224_v47 = vmax.f32 %v1218_v43, 0.0 }
 0x456   :  { %v1225_v49 = vmax.f32 %v1220_v45, 0.0 }
 0x457   :  { %v1226_v0 = vpack.c.bf16 %v1224_v47, %v1222_v46 }
 0x458   :  { %v1227_v50 = vpack.c.bf16 %v1225_v49, %v1223_v48 }
 0x45a   :  { %1524 = vmatprep.mubr.msk.bf16.mxu0 %vm1315_vm3, %v1227_v50 }
 0x45b   :  { %1352 = vmatmul.mubr.bf16.vlgmr.msra.gmra.mrb[8].mxu0 %v1226_v0 }
 0x52e   :  { %v1353_v51 = vpop.f32.mrb[8].mxu0 }
 0x52f   :  { %v1354_v33 = vadd.f32 %v1513_v30, %v1353_v51  ;;  %v1355_v52 = vpop.f32.mrb[9].mxu0 }
 0x530   :  { %v1356_v53 = vpop.f32.mrb[10].mxu0 }
 0x531   :  { %v1525_v54 = vmul.f32 -1.442695, %v1354_v33  ;;  %v1357_v34 = vadd.f32 %v1513_v30, %v1356_v53  ;;  %v1358_v55 = vpop.f32.mrb[11].mxu0 }
 0x533   :  { %1732 = vpow2.f32 %v1525_v54  ;;  %v1526_v56 = vmul.f32 -1.442695, %v1357_v34 }
 0x535   :  { %1734 = vpow2.f32 %v1526_v56 }
 0x53d   :  { %v1733_v57 = vpop.eup %1732 }
 0x53e   :  { %v1369_v26 = vadd.f32 1.0, %v1733_v57 }
 0x53f   :  { %v1735_v35 = vpop.eup %1734 }
 0x540   :  { %1736 = vrcp.f32 %v1369_v26  ;;  %v1370_v58 = vadd.f32 1.0, %v1735_v35 }
 0x542   :  { %1738 = vrcp.f32 %v1370_v58 }
 0x54a   :  { %v1737_v60 = vpop.eup %1736 }
 0x54b   :  { %v1375_v61 = vsel %vm1362_vm4, %v1737_v60, %v1064_v23 }
 0x54c   :  { %v1739_v62 = vpop.eup %1738  ;;  %1377 = vst [vmem:[#allocation20] sm:$0xff] %v1375_v61 }
 0x54d   :  { %v1376_v63 = vsel %vm1362_vm4, %v1739_v62, %v1067_v24 }
 0x54e   :  { %1378 = vst [vmem:[#allocation20 + $0x8] sm:$0xff] %v1376_v63 }
 0x54f   :  { %1993 = shalt.err (!%p1990_p8)
}
 0x550   :  { %s1994_s17 = scalar_lea.hbm %s2323_s11, 256 }
 0x551   :  { %p1995_p9 = scmp.ne.s32.totalorder %s2323_s11, %s1994_s17  ;;  %p1998_p10 = scmp.lt.u32.totalorder %s1994_s17, %s2323_s11 }
 0x553   :  { %p2000_p11 = pnand %p1998_p10, %p1995_p9 }
 0x555   :  { %2003 = shalt.err (!%p2000_p11)
}
 0x556   :  { %1390 = dma.vmem_to_hbm [thread:$0]  %s1385_s4, 256, %s2323_s11, [#allocation4], %s2026_s5, %s2026_s5, %s2027_s24  }
 0x557   :  { %2016 = dma.done.wait [#allocation4], 256  }
 0x558   :  { %2017 = vsyncadd [#allocation4], 4294967040 }
 0x559   :  { %1394 = vsyncpa [#allocation3], 1 }
 0x55a   :  { %1395 = vsyncpa [#allocation6], 1 }
 0x55b   :  { %1396 = vsyncpa [#allocation9], 1 }
 0x55c   :  { %1397 = vsyncpa [#allocation12], 1 }
 0x55d   :  { %1398 = vsyncpa [#allocation15], 1 }
 0x55e   :  { %1399 = vsyncpa [#allocation18], 1 }
 0x55f   :  { %1400 = vsyncpa [#allocation4], 1 }

</bundles_post_ra>
